<compile_context>
chip_gen: v6e
topology: v6e:2x2x1
jax: 0.10.0
libtpu: 0.0.40
codegen_flags: <defaults>
</compile_context>

<pallas_src>
import numpy as np
import jax
import jax.numpy as jnp
from jax.experimental import pallas as pl
from jax.experimental.pallas import tpu as pltpu


# ----------------------------- Pallas kernel --------------------------------
def ffm_kernel(hi_ref, lo_ref, b_ref, dww_ref, dwb_ref,
               wl_ref, wh_ref, bias_ref, out_ref):
    # hi_ref  : (TM, Ch)      bf16  higher-res features for this spatial tile
    # lo_ref  : (hw, Cl)      f32   full lower-res feature map (one batch elem)
    # b_ref   : (TM, 9*hw)    bf16  fused (bilinear x4 upsample + 3x3 tap shift)
    # dww_ref : (9*hw, Cl)    f32   BN-folded depthwise weights, tap-major, row-repeated
    # dwb_ref : (1, Cl)       f32   depthwise BN bias
    # wl_ref  : (Cl, Cop)     bf16  lower 1x1 conv + BN folded (zero-padded to Cop)
    # wh_ref  : (Ch, Cop)     bf16  higher 1x1 conv + BN folded (zero-padded to Cop)
    # bias_ref: (1, Cop)      f32   combined bias b_low + b_high (zero-padded)
    # out_ref : (TM, Cop)     f32
    lo = lo_ref[...]                                          # (hw, Cl) f32

    # Per-tap per-channel scale in f32 (VPU), then cast to bf16 for the MXU.
    lo_rep = jnp.concatenate([lo] * 9, axis=0)                # (9*hw, Cl)
    lo_scaled = (lo_rep * dww_ref[...]).astype(jnp.bfloat16)  # (9*hw, Cl)

    # Bilinear x4 upsample + all 9 depthwise-3x3 taps fused into ONE matmul.
    dw = jnp.dot(b_ref[...], lo_scaled,
                 preferred_element_type=jnp.float32)          # (TM, Cl) f32
    dw = jnp.maximum(dw + dwb_ref[...], 0.0)                  # BN bias + ReLU (f32)

    # 1x1 projections (+ folded BN), shared bias / add / ReLU epilogue.
    y = (jnp.dot(dw.astype(jnp.bfloat16), wl_ref[...],
                 preferred_element_type=jnp.float32)
         + jnp.dot(hi_ref[...], wh_ref[...],
                   preferred_element_type=jnp.float32)
         + bias_ref[...])
    out_ref[...] = jnp.maximum(y, 0.0).astype(out_ref.dtype)


# ----------------------------- wrapper ---------------------------------------
def feature_fusion(higher_nhwc, lower_nhwc, params):
    N, H, W, Ch = higher_nhwc.shape
    _, h, w, Cl = lower_nhwc.shape
    HW, hw = H * W, h * w
    Co = params["w_low"].shape[1]
    Cop = params["w_low_p"].shape[1]

    TM = 128 if HW % 128 == 0 else HW        # spatial tile (multiple of 8)
    m_blocks = HW // TM

    hi2 = higher_nhwc.reshape(N, HW, Ch).astype(jnp.bfloat16)
    lo2 = lower_nhwc.reshape(N, hw, Cl).astype(jnp.float32)

    flops = 2 * N * HW * (9 * hw * Cl + (Cl + Ch) * Cop)
    bytes_accessed = (N * HW * 9 * hw * 2          # B_cat streamed per batch
                      + N * HW * Ch * 2            # hi (bf16)
                      + N * hw * Cl * 4            # lo (f32)
                      + N * HW * Cop * 4           # output (f32)
                      + (9 * hw * Cl + Cl * Cop + Ch * Cop + Cop + Cl) * 4)

    out = pl.pallas_call(
        ffm_kernel,
        out_shape=jax.ShapeDtypeStruct((N, HW, Cop), jnp.float32),
        grid_spec=pltpu.PrefetchScalarGridSpec(
            num_scalar_prefetch=0,
            grid=(N, m_blocks),
            in_specs=[
                pl.BlockSpec((pl.Squeezed(), TM, Ch), lambda n, m: (n, m, 0)),
                pl.BlockSpec((pl.Squeezed(), hw, Cl), lambda n, m: (n, 0, 0)),
                pl.BlockSpec((TM, 9 * hw),            lambda n, m: (m, 0)),
                pl.BlockSpec((9 * hw, Cl),            lambda n, m: (0, 0)),
                pl.BlockSpec((1, Cl),                 lambda n, m: (0, 0)),
                pl.BlockSpec((Cl, Cop),               lambda n, m: (0, 0)),
                pl.BlockSpec((Ch, Cop),               lambda n, m: (0, 0)),
                pl.BlockSpec((1, Cop),                lambda n, m: (0, 0)),
            ],
            out_specs=pl.BlockSpec((pl.Squeezed(), TM, Cop),
                                   lambda n, m: (n, m, 0)),
        ),
        compiler_params=pltpu.CompilerParams(
            dimension_semantics=("parallel", "parallel"),
            vmem_limit_bytes=64 * 1024 * 1024,
        ),
        cost_estimate=pl.CostEstimate(flops=flops, transcendentals=0,
                                      bytes_accessed=bytes_accessed),
    )(hi2, lo2, params["B_cat"],
      params["dww_rep"], params["dw_b2"],
      params["w_low_p"], params["w_high_p"], params["bias_cat"])

    # Drop the lane-padding columns, restore NHWC.
    return out[:, :, :Co].reshape(N, H, W, Co)


# ----------------------------- param / matrix setup --------------------------
def bilinear_matrix_align_corners(out_size, in_size):
    M = np.zeros((out_size, in_size), np.float32)
    if out_size == 1:
        M[0, 0] = 1.0
        return M
    for i in range(out_size):
        src = i * (in_size - 1) / (out_size - 1)
        lo = int(np.floor(src))
        hi = min(lo + 1, in_size - 1)
        frac = src - lo
        M[i, lo] += 1.0 - frac
        M[i, hi] += frac
    return M


def shift_matrix(size, d):
    S = np.zeros((size, size), np.float32)
    for i in range(size):
        p = i + d
        if 0 <= p < size:
            S[i, p] = 1.0
    return S


def init_params(key, higher_c, lower_c, out_c, H, W, h, w):
    # Channel multiplier 1 (typical FastSCNN config: out_channels == lower_in_channels)
    assert out_c == lower_c, "depthwise groups=lower_in_channels with multiplier 1"
    eps = 1e-5
    ks = jax.random.split(key, 14)

    # ---- DWConv(3x3, groups=Cl, bias=False) + BN + ReLU ----
    dw_w = 0.1 * jax.random.normal(ks[0], (3, 3, lower_c), jnp.float32)
    g1 = 1.0 + 0.1 * jax.random.normal(ks[1], (lower_c,), jnp.float32)
    be1 = 0.1 * jax.random.normal(ks[2], (lower_c,), jnp.float32)
    m1 = 0.1 * jax.random.normal(ks[3], (lower_c,), jnp.float32)
    v1 = jax.random.uniform(ks[4], (lower_c,), jnp.float32, 0.5, 1.5)
    s1 = g1 / jnp.sqrt(v1 + eps)
    dw_w_f = dw_w * s1[None, None, :]                 # (3, 3, Cl)
    dw_b_f = be1 - m1 * s1                            # (Cl,)

    # ---- conv_lower_res: Conv1x1(Co, Cl, bias=True) + BN ----
    w2 = jax.random.normal(ks[5], (out_c, lower_c), jnp.float32) / np.sqrt(lower_c)
    bias2 = 0.1 * jax.random.normal(ks[6], (out_c,), jnp.float32)
    g2 = 1.0 + 0.1 * jax.random.normal(ks[7], (out_c,), jnp.float32)
    be2 = 0.1 * jax.random.normal(ks[8], (out_c,), jnp.float32)
    m2 = 0.1 * jax.random.normal(ks[9], (out_c,), jnp.float32)
    v2 = jax.random.uniform(ks[10], (out_c,), jnp.float32, 0.5, 1.5)
    s2 = g2 / jnp.sqrt(v2 + eps)
    w_low = (w2 * s2[:, None]).T                      # (Cl, Co)
    b_low = s2 * (bias2 - m2) + be2                   # (Co,)

    # ---- conv_higher_res: Conv1x1(Co, Ch, bias=True) + BN ----
    w3 = jax.random.normal(ks[11], (out_c, higher_c), jnp.float32) / np.sqrt(higher_c)
    bias3 = 0.1 * jax.random.normal(ks[12], (out_c,), jnp.float32)
    kk = jax.random.split(ks[13], 4)
    g3 = 1.0 + 0.1 * jax.random.normal(kk[0], (out_c,), jnp.float32)
    be3 = 0.1 * jax.random.normal(kk[1], (out_c,), jnp.float32)
    m3 = 0.1 * jax.random.normal(kk[2], (out_c,), jnp.float32)
    v3 = jax.random.uniform(kk[3], (out_c,), jnp.float32, 0.5, 1.5)
    s3 = g3 / jnp.sqrt(v3 + eps)
    w_high = (w3 * s3[:, None]).T                     # (Ch, Co)
    b_high = s3 * (bias3 - m3) + be3                  # (Co,)

    # ---- fused upsample (+shift) matrices, tap-major (ki*3+kj) ----
    Mh = bilinear_matrix_align_corners(H, h)
    Mw = bilinear_matrix_align_corners(W, w)
    B = np.zeros((9, H * W, h * w), np.float32)
    for ki in range(3):
        Ah = shift_matrix(H, ki - 1) @ Mh
        for kj in range(3):
            Aw = shift_matrix(W, kj - 1) @ Mw
            B[ki * 3 + kj] = np.kron(Ah, Aw)
    # Concatenate the 9 taps along K: (H*W, 9*h*w)  (K ordering = tap-major, then spatial)
    B_cat = B.transpose(1, 0, 2).reshape(H * W, 9 * h * w)

    # ---- kernel-packed operands ----
    Cop = ((out_c + 127) // 128) * 128                # lane-dense output width
    dww_flat = np.asarray(dw_w_f).reshape(9, lower_c)           # (9, Cl), tap-major
    dww_rep = np.repeat(dww_flat, h * w, axis=0)                # (9*h*w, Cl)

    w_low_p = np.zeros((lower_c, Cop), np.float32)
    w_low_p[:, :out_c] = np.asarray(w_low)
    w_high_p = np.zeros((higher_c, Cop), np.float32)
    w_high_p[:, :out_c] = np.asarray(w_high)
    bias_cat = np.zeros((1, Cop), np.float32)
    bias_cat[0, :out_c] = np.asarray(b_low + b_high)

    params = {
        # f32 reference params
        "Mh": jnp.asarray(Mh), "Mw": jnp.asarray(Mw),
        "dw_w": jnp.asarray(dww_flat),                 # (9, Cl)
        "dw_b": jnp.asarray(dw_b_f).reshape(1, lower_c),
        "w_low": w_low, "b_low": b_low.reshape(1, out_c),
        "w_high": w_high, "b_high": b_high.reshape(1, out_c),
        # kernel-packed operands (MXU operands in bf16, epilogue params in f32)
        "B_cat": jnp.asarray(B_cat, jnp.bfloat16),
        "dww_rep": jnp.asarray(dww_rep, jnp.float32),
        "dw_b2": jnp.asarray(dw_b_f, jnp.float32).reshape(1, lower_c),
        "w_low_p": jnp.asarray(w_low_p, jnp.bfloat16),
        "w_high_p": jnp.asarray(w_high_p, jnp.bfloat16),
        "bias_cat": jnp.asarray(bias_cat, jnp.float32),
    }
    return params


# ----------------------------- pure-JAX reference ----------------------------
def reference(higher_nhwc, lower_nhwc, p):
    Mh, Mw = p["Mh"], p["Mw"]
    up = jnp.einsum('ip,npqc->niqc', Mh, lower_nhwc)
    up = jnp.einsum('jq,niqc->nijc', Mw, up)
    Nb, H, W, Cl = up.shape
    up_pad = jnp.pad(up, ((0, 0), (1, 1), (1, 1), (0, 0)))
    dww = p["dw_w"].reshape(3, 3, Cl)
    dw = jnp.zeros_like(up)
    for ki in range(3):
        for kj in range(3):
            dw = dw + up_pad[:, ki:ki + H, kj:kj + W, :] * dww[ki, kj][None, None, None, :]
    dw = jnp.maximum(dw + p["dw_b"][0], 0.0)
    low = jnp.einsum('nijc,co->nijo', dw, p["w_low"]) + p["b_low"][0]
    high = jnp.einsum('nijc,co->nijo', higher_nhwc, p["w_high"]) + p["b_high"][0]
    return jnp.maximum(low + high, 0.0)


# ----------------------------- main -------------------------------------------
if __name__ == "__main__":
    # Small shapes: batch=2, higher (N, Ch=8, 16, 16) in PyTorch NCHW terms,
    # lower (N, Cl=16, 4, 4); scale_factor=4, out_channels=16.
    N, H, W = 2, 16, 16
    h, w = H // 4, W // 4
    higher_c, lower_c, out_c = 8, 16, 16

    key = jax.random.PRNGKey(0)
    k_hi, k_lo, k_par = jax.random.split(key, 3)
    higher = jax.random.normal(k_hi, (N, H, W, higher_c), jnp.float32)   # NHWC
    lower = jax.random.normal(k_lo, (N, h, w, lower_c), jnp.float32)     # NHWC

    params = init_params(k_par, higher_c, lower_c, out_c, H, W, h, w)

    out = feature_fusion(higher, lower, params)
    out = jax.block_until_ready(out)

    ref = jax.block_until_ready(reference(higher, lower, params))
    max_err = float(jnp.max(jnp.abs(out - ref)))
    assert out.shape == (N, H, W, out_c), out.shape
    # Reference is pure f32; kernel feeds bf16 to the MXU (f32 accumulation),
    # so allow bf16-level error.
    assert max_err < 1e-1, f"mismatch vs f32 reference: {max_err}"

    print("KERNEL_OK")
</pallas_src>

<mosaic_0001>
module attributes {stable_mosaic.version = 11 : i64} {
  func.func @ffm_kernel(%arg0: i32, %arg1: i32, %arg2: memref<1x128x8xbf16, #tpu.memory_space<vmem>>, %arg3: memref<1x16x16xf32, #tpu.memory_space<vmem>>, %arg4: memref<128x144xbf16, #tpu.memory_space<vmem>>, %arg5: memref<144x16xf32, #tpu.memory_space<vmem>>, %arg6: memref<1x16xf32, #tpu.memory_space<vmem>>, %arg7: memref<16x128xbf16, #tpu.memory_space<vmem>>, %arg8: memref<8x128xbf16, #tpu.memory_space<vmem>>, %arg9: memref<1x128xf32, #tpu.memory_space<vmem>>, %arg10: memref<1x128x128xf32, #tpu.memory_space<vmem>>) attributes {dimension_semantics = [#tpu.dimension_semantics<parallel>, #tpu.dimension_semantics<parallel>], iteration_bounds = array<i64: 2, 2>, scalar_prefetch = 0 : i64, scratch_operands = 0 : i64, tpu.core_type = #tpu.core_type<tc>, window_params = [{transform_indices = @transform_0, window_bounds = array<i64: 1, 128, 8>}, {transform_indices = @transform_1, window_bounds = array<i64: 1, 16, 16>}, {transform_indices = @transform_2, window_bounds = array<i64: 128, 144>}, {pipeline_mode = #tpu.pipeline_mode<synchronous>, transform_indices = @transform_3, window_bounds = array<i64: 144, 16>}, {pipeline_mode = #tpu.pipeline_mode<synchronous>, transform_indices = @transform_4, window_bounds = array<i64: 1, 16>}, {pipeline_mode = #tpu.pipeline_mode<synchronous>, transform_indices = @transform_5, window_bounds = array<i64: 16, 128>}, {pipeline_mode = #tpu.pipeline_mode<synchronous>, transform_indices = @transform_6, window_bounds = array<i64: 8, 128>}, {pipeline_mode = #tpu.pipeline_mode<synchronous>, transform_indices = @transform_7, window_bounds = array<i64: 1, 128>}, {transform_indices = @transform_8, window_bounds = array<i64: 1, 128, 128>}]} {
    %c0 = arith.constant 0 : index
    %c0_0 = arith.constant 0 : index
    %c0_1 = arith.constant 0 : index
    %0 = vector.load %arg3[%c0, %c0_0, %c0_1] : memref<1x16x16xf32, #tpu.memory_space<vmem>>, vector<1x16x16xf32>
    %1 = vector.shape_cast %0 : vector<1x16x16xf32> to vector<16x16xf32>
    %2 = tpu.concatenate %1, %1, %1, %1, %1, %1, %1, %1, %1 in 0 : vector<16x16xf32>, vector<16x16xf32>, vector<16x16xf32>, vector<16x16xf32>, vector<16x16xf32>, vector<16x16xf32>, vector<16x16xf32>, vector<16x16xf32>, vector<16x16xf32> -> vector<144x16xf32>
    %c0_2 = arith.constant 0 : index
    %c0_3 = arith.constant 0 : index
    %3 = vector.load %arg5[%c0_2, %c0_3] : memref<144x16xf32, #tpu.memory_space<vmem>>, vector<144x16xf32>
    %4 = arith.mulf %2, %3 : vector<144x16xf32>
    %5 = arith.truncf %4 : vector<144x16xf32> to vector<144x16xbf16>
    %c0_4 = arith.constant 0 : index
    %c0_5 = arith.constant 0 : index
    %6 = vector.load %arg4[%c0_4, %c0_5] : memref<128x144xbf16, #tpu.memory_space<vmem>>, vector<128x144xbf16>
    %cst = arith.constant dense<0.000000e+00> : vector<128x16xf32>
    %7 = tpu.matmul %6, %5, %cst {dimension_numbers = #tpu.dot_dimension_numbers<[1], [0], [0], [1], [0, 0, 1, 1], [], []>} : vector<128x144xbf16>, vector<144x16xbf16>, vector<128x16xf32> -> vector<128x16xf32>
    %c0_6 = arith.constant 0 : index
    %c0_7 = arith.constant 0 : index
    %8 = vector.load %arg6[%c0_6, %c0_7] : memref<1x16xf32, #tpu.memory_space<vmem>>, vector<1x16xf32>
    %9 = vector.broadcast %8 : vector<1x16xf32> to vector<128x16xf32>
    %10 = arith.addf %7, %9 : vector<128x16xf32>
    %cst_8 = arith.constant 0.000000e+00 : f32
    %11 = vector.broadcast %cst_8 : f32 to vector<128x16xf32>
    %12 = arith.maximumf %10, %11 : vector<128x16xf32>
    %13 = arith.truncf %12 : vector<128x16xf32> to vector<128x16xbf16>
    %c0_9 = arith.constant 0 : index
    %c0_10 = arith.constant 0 : index
    %14 = vector.load %arg7[%c0_9, %c0_10] : memref<16x128xbf16, #tpu.memory_space<vmem>>, vector<16x128xbf16>
    %cst_11 = arith.constant dense<0.000000e+00> : vector<128x128xf32>
    %15 = tpu.matmul %13, %14, %cst_11 {dimension_numbers = #tpu.dot_dimension_numbers<[1], [0], [0], [1], [0, 0, 1, 1], [], []>} : vector<128x16xbf16>, vector<16x128xbf16>, vector<128x128xf32> -> vector<128x128xf32>
    %c0_12 = arith.constant 0 : index
    %c0_13 = arith.constant 0 : index
    %c0_14 = arith.constant 0 : index
    %16 = vector.load %arg2[%c0_12, %c0_13, %c0_14] : memref<1x128x8xbf16, #tpu.memory_space<vmem>>, vector<1x128x8xbf16>
    %17 = vector.shape_cast %16 : vector<1x128x8xbf16> to vector<128x8xbf16>
    %c0_15 = arith.constant 0 : index
    %c0_16 = arith.constant 0 : index
    %18 = vector.load %arg8[%c0_15, %c0_16] : memref<8x128xbf16, #tpu.memory_space<vmem>>, vector<8x128xbf16>
    %cst_17 = arith.constant dense<0.000000e+00> : vector<128x128xf32>
    %19 = tpu.matmul %17, %18, %cst_17 {dimension_numbers = #tpu.dot_dimension_numbers<[1], [0], [0], [1], [0, 0, 1, 1], [], []>} : vector<128x8xbf16>, vector<8x128xbf16>, vector<128x128xf32> -> vector<128x128xf32>
    %20 = arith.addf %15, %19 : vector<128x128xf32>
    %c0_18 = arith.constant 0 : index
    %c0_19 = arith.constant 0 : index
    %21 = vector.load %arg9[%c0_18, %c0_19] : memref<1x128xf32, #tpu.memory_space<vmem>>, vector<1x128xf32>
    %22 = vector.broadcast %21 : vector<1x128xf32> to vector<128x128xf32>
    %23 = arith.addf %20, %22 : vector<128x128xf32>
    %cst_20 = arith.constant 0.000000e+00 : f32
    %24 = vector.broadcast %cst_20 : f32 to vector<128x128xf32>
    %25 = arith.maximumf %23, %24 : vector<128x128xf32>
    %c0_21 = arith.constant 0 : index
    %c0_22 = arith.constant 0 : index
    %c0_23 = arith.constant 0 : index
    %26 = vector.load %arg10[%c0_21, %c0_22, %c0_23] : memref<1x128x128xf32, #tpu.memory_space<vmem>>, vector<1x128x128xf32>
    %27 = vector.shape_cast %26 : vector<1x128x128xf32> to vector<128x128xf32>
    %28 = vector.shape_cast %25 : vector<128x128xf32> to vector<1x128x128xf32>
    tpu.vector_store %arg10[%c0_21, %c0_22, %c0_23], %28 {strides = array<i32>} : memref<1x128x128xf32, #tpu.memory_space<vmem>>, vector<1x128x128xf32>,
    return
  }
  func.func @transform_0(%arg0: i32, %arg1: i32) -> (i32, i32, i32) {
    %c0_i32 = arith.constant 0 : i32
    %c0_i32_0 = arith.constant 0 : i32
    return %arg0, %arg1, %c0_i32 : i32, i32, i32
  }
  func.func @transform_1(%arg0: i32, %arg1: i32) -> (i32, i32, i32) {
    %c0_i32 = arith.constant 0 : i32
    %c0_i32_0 = arith.constant 0 : i32
    %c0_i32_1 = arith.constant 0 : i32
    return %arg0, %c0_i32, %c0_i32_0 : i32, i32, i32
  }
  func.func @transform_2(%arg0: i32, %arg1: i32) -> (i32, i32) {
    %c0_i32 = arith.constant 0 : i32
    %c0_i32_0 = arith.constant 0 : i32
    return %arg1, %c0_i32 : i32, i32
  }
  func.func @transform_3(%arg0: i32, %arg1: i32) -> (i32, i32) {
    %c0_i32 = arith.constant 0 : i32
    %c0_i32_0 = arith.constant 0 : i32
    %c0_i32_1 = arith.constant 0 : i32
    return %c0_i32, %c0_i32_0 : i32, i32
  }
  func.func @transform_4(%arg0: i32, %arg1: i32) -> (i32, i32) {
    %c0_i32 = arith.constant 0 : i32
    %c0_i32_0 = arith.constant 0 : i32
    %c0_i32_1 = arith.constant 0 : i32
    return %c0_i32, %c0_i32_0 : i32, i32
  }
  func.func @transform_5(%arg0: i32, %arg1: i32) -> (i32, i32) {
    %c0_i32 = arith.constant 0 : i32
    %c0_i32_0 = arith.constant 0 : i32
    %c0_i32_1 = arith.constant 0 : i32
    return %c0_i32, %c0_i32_0 : i32, i32
  }
  func.func @transform_6(%arg0: i32, %arg1: i32) -> (i32, i32) {
    %c0_i32 = arith.constant 0 : i32
    %c0_i32_0 = arith.constant 0 : i32
    %c0_i32_1 = arith.constant 0 : i32
    return %c0_i32, %c0_i32_0 : i32, i32
  }
  func.func @transform_7(%arg0: i32, %arg1: i32) -> (i32, i32) {
    %c0_i32 = arith.constant 0 : i32
    %c0_i32_0 = arith.constant 0 : i32
    %c0_i32_1 = arith.constant 0 : i32
    return %c0_i32, %c0_i32_0 : i32, i32
  }
  func.func @transform_8(%arg0: i32, %arg1: i32) -> (i32, i32, i32) {
    %c0_i32 = arith.constant 0 : i32
    %c0_i32_0 = arith.constant 0 : i32
    return %arg0, %arg1, %c0_i32 : i32, i32, i32
  }
}

</mosaic_0001>

<bundles_post_ra>
// kernel: tpu_custom_call.1
= control target key start
LH: loop header
LB: loop body
LE: loop exit
PB: predicated region body
PF: predicated region fallthrough
CT: control target
= control target key end

     0   :  { %13 = vsyncpa [#allocation3], 0  ;;  %s1906_s0 = inlined_call_operand.vmem [shape: bf16[2,256,8], index: 0, kind: input, shape index: {}]   ;;  %s1907_s1 = inlined_call_operand.vmem [shape: f32[2,16,16], index: 1, kind: input, shape index: {}]   ;;  %s1908_s2 = inlined_call_operand.vmem [shape: bf16[256,144], index: 2, kind: input, shape index: {}]   ;;  %s1909_s3 = inlined_call_operand.vmem [shape: f32[144,16], index: 3, kind: input, shape index: {}]   ;;  %s1910_s4 = inlined_call_operand.vmem [shape: f32[1,16], index: 4, kind: input, shape index: {}]   ;;  %s1911_s5 = inlined_call_operand.vmem [shape: bf16[16,128], index: 5, kind: input, shape index: {}]   ;;  %s1912_s6 = inlined_call_operand.vmem [shape: bf16[8,128], index: 6, kind: input, shape index: {}]   ;;  %s1913_s7 = inlined_call_operand.vmem [shape: f32[1,128], index: 7, kind: input, shape index: {}]   ;;  %s1914_s8 = inlined_call_operand.hbm [shape: f32[2,256,128], index: 8, kind: output, shape index: {}]  }
   0x1   :  { %15 = vsyncpa [#allocation3 + $0x1], 0  ;;  %s1536_s27 = smov 0   ;;  %s1538_s28 = smov 0  }
   0x2   :  { %s1540_s29 = smov 0   ;;  %s1542_s30 = smov 0  }
   0x3   :  { %s1544_s9 = smov 0   ;;  %s1546_s10 = smov 0  }
   0x4   :  { %s1548_s11 = smov 0   ;;  %s1550_s12 = smov 0  }
   0x5 LB: > { %1919 = sst [smem:[#allocation5_spill]] %s1477_s10  ;;  %s1158_s13 = sadd.s32 4294967295, %s1485_s12   ;;  %s1485_s12 = sphi %s1550_s12, %s21_s12   ;;  %s1481_s11 = sphi %s1548_s11, %s1930_s11   ;;  %s1477_s10 = sphi %s1546_s10, %s1929_s10   ;;  %s1473_s9 = sphi %s1544_s9, %s1928_s9   ;;  %s1469_s30 = sphi %s1542_s30, %s1927_s30   ;;  %s1465_s29 = sphi %s1540_s29, %s1933_s29   ;;  %s1461_s28 = sphi %s1538_s28, %s1932_s28   ;;  %s1457_s27 = sphi %s1536_s27, %s1931_s27  }
   0x6   : > { %1920 = sst [smem:[#allocation6_spill]] %s1481_s11  ;;  %s1159_s14 = sadd.s32 4294967294, %s1485_s12  }
   0x7   : > { %s30_s15 = sadd.s32 1, %s1477_s10  ;;  %s33_s16 = sadd.s32 1, %s1481_s11 }
   0x8   : > { %p31_p0 = scmp.ge.s32.totalorder %s30_s15, 2  ;;  %p237_p1 = scmp.ne.s32.totalorder %s1465_s29, %s1461_s28 }
   0x9   : > { %p238_p2 = scmp.eq.s32.totalorder %s1158_s13, 3  ;;  %p243_p5 = scmp.ne.s32.totalorder %s1461_s28, %s1457_s27 }
   0xa   : > { %s1935_s15 = smov (%p31_p0, %s30_s15), 0  ;;  %s1937_s16 = smov (!%p31_p0, %s33_s16), %s1481_s11 }
   0xb   : > { %1921 = sst [smem:[#allocation7_spill]] %s1935_s15  ;;  %s223_s17 = ssub.s32 %s1477_s10, %s1935_s15 }
   0xc   : > { %p1587_p3 = por %p238_p2, %p237_p1  ;;  %p35_p4 = scmp.ge.s32.totalorder %s1937_s16, 2 }
   0xd   : > { %p244_p6 = scmp.eq.s32.totalorder %s1159_s14, 3  ;;  %p1162_p7 = scmp.ge.s32.totalorder %s1485_s12, 1 }
   0xe   : > { %s1939_s16 = smov (%p35_p4, %s1937_s16), 0  ;;  %p308_p9 = scmp.lt.s32.totalorder %s1485_s12, 5 }
   0xf   : > { %1923 = sst [smem:[#allocation8_spill]] %s1939_s16  ;;  %p1596_p8 = por %p244_p6, %p243_p5 }
  0x10   : > { %s222_s20 = ssub.s32 %s1481_s11, %s1939_s16  ;;  %s227_s21 = sadd.s32 1, %s1465_s29 }
  0x11   : > { %s224_s22 = sor.u32 %s223_s17, %s222_s20  ;;  %p309_p10 = pnand %p1162_p7, %p308_p9 }
  0x12   : > { %p225_p11 = scmp.eq.s32.totalorder %s224_s22, 0  ;;  %s1608_s24 = sshll.u32 (!%p309_p10), %s1469_s30, 4 }
  0x13   : > { %312 = sbr.rel (%p309_p10) target bundleno = 546 (0x222), region = 52  ;;  %p358_p12 = scmp.lt.s32.totalorder (!%p309_p10), %s1473_s9, 1 }
  0x14   : > { %s1605_s23 = scalar_select %p225_p11, %s1465_s29, %s227_s21  }
  0x15   : > { %p360_p13 = scmp.lt.s32.totalorder (!%p309_p10), %s1608_s24, 31 }
  0x16   : > { %1925 = sst [smem:[#allocation9_spill]] %s1605_s23 }
  0x18   : > { %v1487_v0 = vmov 0   ;;  %s359_s25 = scalar_select %p358_p12, %s1473_s9, 1  ;;  %v397_v1 = vld [vmem:[%s1909_s3 + $0x70] sm:$0xff]  ;;  %v398_v2 = vld [vmem:[%s1909_s3 + $0x78] sm:$0xff]  ;;  %v395_v3 = vld [vmem:[%s1909_s3 + $0x60] sm:$0xff]  ;;  %vm753_vm0 = vcmask 1043456  }
  0x19   : > { %548 = vmatprep.subr.bf16.mxu0 %v1487_v0  ;;  %s361_s26 = scalar_select %p360_p13, %s1608_s24, 31  ;;  %v396_v4 = vld [vmem:[%s1909_s3 + $0x68] sm:$0xff]  ;;  %v687_v7 = vld [vmem:[%s1912_s6] sm:$0xf]  ;;  %v393_v12 = vld [vmem:[%s1909_s3 + $0x50] sm:$0xff]  ;;  %vm523_vm1 = vcmask 130048  }
  0x1a   : > { %s1229_s17 = sshll.u32 %s359_s25, 4  ;;  %s1165_s21 = sshll.u32 %s359_s25, 5  ;;  %1285 = vmatprep.subr.msk.bf16.mxu1 %vm753_vm0, %v687_v7  ;;  %v394_v13 = vld [vmem:[%s1909_s3 + $0x58] sm:$0xff]  ;;  %v391_v19 = vld [vmem:[%s1909_s3 + $0x40] sm:$0xff]  ;;  %v392_v20 = vld [vmem:[%s1909_s3 + $0x48] sm:$0xff]  ;;  %v755_v21 = vsel %vm753_vm0, %v687_v7, 0 }
  0x1b   : > { %s371_s23 = scalar_lea.vmem %s1907_s1, %s1229_s17  ;;  %s1230_s13 = sshll.u32 %s361_s26, 3  ;;  %1250 = vmatpush3.bf16.msra.mxu1 %v755_v21  ;;  %v389_v25 = vld [vmem:[%s1909_s3 + $0x30] sm:$0xff]  ;;  %v390_v26 = vld [vmem:[%s1909_s3 + $0x38] sm:$0xff]  ;;  %v387_v27 = vld [vmem:[%s1909_s3 + $0x20] sm:$0xff]  ;;  %vm728_vm2 = vcmask 64512  }
  0x1c   : > { %v1630_v5 = vld [vmem:[%s371_s23] sm:$0xff]  ;;  %v1632_v6 = vld [vmem:[%s371_s23 + $0x8] sm:$0xff]  ;;  %s1640_s15 = scalar_lea.vmem %s1908_s2, %s1230_s13  ;;  %s363_s25 = sadd.s32 %s1165_s21, %s361_s26  ;;  %v385_v35 = vld [vmem:[%s1909_s3 + $0x10] sm:$0xff] }
  0x1d   : > { %v415_v8 = vmul.f32 %v397_v1, %v1630_v5  ;;  %v416_v9 = vmul.f32 %v398_v2, %v1632_v6  ;;  %v413_v10 = vmul.f32 %v395_v3, %v1630_v5  ;;  %v414_v11 = vmul.f32 %v396_v4, %v1632_v6  ;;  %v1362_v15 = vld [vmem:[%s1640_s15 + $0x4] ss:$8 sps:$4 sm:$0xff]   ;;  %s1166_s30 = sshll.u32 %s363_s25, 2  ;;  %v386_v36 = vld [vmem:[%s1909_s3 + $0x18] sm:$0xff]  ;;  %v1360_v55 = vld [vmem:[%s1640_s15] ss:$8 sps:$4 sm:$0xff]  }
  0x1e   : > { %v411_v17 = vmul.f32 %v393_v12, %v1630_v5  ;;  %v412_v18 = vmul.f32 %v394_v13, %v1632_v6  ;;  %1189 = vmatprep.mubr.msk.bf16.mxu0 %vm523_vm1, %v1362_v15  ;;  %v409_v23 = vmul.f32 %v391_v19, %v1630_v5  ;;  %v410_v24 = vmul.f32 %v392_v20, %v1632_v6  ;;  %s1673_s11 = scalar_lea.vmem %s1906_s0, %s1166_s30  ;;  %v388_v28 = vld [vmem:[%s1909_s3 + $0x28] sm:$0xff]  ;;  %v383_v44 = vld [vmem:[%s1909_s3] sm:$0xff]  ;;  %v1363_v56 = vld [vmem:[%s1640_s15 + $0x14] ss:$8 sps:$4 sm:$0xff]   ;;  %s1225_s23 = sshll.u32 %s1473_s9, 5 }
  0x1f   : > { %v426_v14 = vpack.c.bf16 %v416_v9, %v415_v8  ;;  %v425_v16 = vpack.c.bf16 %v414_v11, %v413_v10  ;;  %v407_v30 = vmul.f32 %v389_v25, %v1630_v5  ;;  %v408_v31 = vmul.f32 %v390_v26, %v1632_v6  ;;  %v1384_v32 = vld [vmem:[%s1673_s11] sm:$0xff]   ;;  %v1385_v33 = vld [vmem:[%s1673_s11 + $0x8] sm:$0xff]   ;;  %v1386_v34 = vld [vmem:[%s1673_s11 + $0x10] sm:$0xff]   ;;  %s1049_s25 = sadd.s32 %s1225_s23, %s1608_s24 }
  0x20   : > { %v424_v22 = vpack.c.bf16 %v412_v18, %v411_v17  ;;  %v423_v29 = vpack.c.bf16 %v410_v24, %v409_v23  ;;  %1251 = vmatprep.mubr.msk.bf16.mxu1 %vm728_vm2, %v1384_v32  ;;  %v405_v38 = vmul.f32 %v387_v27, %v1630_v5  ;;  %v406_v39 = vmul.f32 %v388_v28, %v1632_v6  ;;  %v1387_v40 = vld [vmem:[%s1673_s11 + $0x18] sm:$0xff]   ;;  %v384_v45 = vld [vmem:[%s1909_s3 + $0x8] sm:$0xff]  ;;  %v399_v49 = vld [vmem:[%s1909_s3 + $0x80] sm:$0xff]  ;;  %s1226_s9 = sshll.u32 %s1049_s25, 7 }
  0x21   : > { %549 = vmatpush1.bf16.msra.mxu0 %v426_v14  ;;  %1252 = vmatmul.mubr.msk.bf16.vlgmr.msra.gmra.mxu1 %vm728_vm2, %v1385_v33  ;;  %v422_v37 = vpack.c.bf16 %v408_v31, %v407_v30  ;;  %v403_v42 = vmul.f32 %v385_v35, %v1630_v5  ;;  %v404_v43 = vmul.f32 %v386_v36, %v1632_v6  ;;  %v400_v50 = vld [vmem:[%s1909_s3 + $0x88] sm:$0xff]  ;;  %v1365_v57 = vld [vmem:[%s1640_s15 + $0x10] ss:$8 sps:$4 sm:$0xff]   ;;  %v1369_v60 = vld [vmem:[%s1640_s15 + $0x34] ss:$8 sps:$4 sm:$0xff]   ;;  %s1845_s14 = scalar_lea.hbm %s1914_s8, %s1226_s9 }
  0x22   : > { %550 = vmatprep.subr.bf16.mxu0 %v1487_v0  ;;  %1255 = vmatprep.mubr.msk.bf16.mxu1 %vm728_vm2, %v1386_v34  ;;  %v421_v41 = vpack.c.bf16 %v406_v39, %v405_v38  ;;  %v401_v47 = vmul.f32 %v383_v44, %v1630_v5  ;;  %v402_v48 = vmul.f32 %v384_v45, %v1632_v6  ;;  %v1366_v58 = vld [vmem:[%s1640_s15 + $0x24] ss:$8 sps:$4 sm:$0xff]   ;;  %v1368_v59 = vld [vmem:[%s1640_s15 + $0x20] ss:$8 sps:$4 sm:$0xff]   ;;  %v1371_v61 = vld [vmem:[%s1640_s15 + $0x30] ss:$8 sps:$4 sm:$0xff]  }
  0x23   : > { %v420_v46 = vpack.c.bf16 %v404_v43, %v403_v42  ;;  %v417_v52 = vmul.f32 %v399_v49, %v1630_v5  ;;  %v418_v53 = vmul.f32 %v400_v50, %v1632_v6  ;;  %v1372_v62 = vld [vmem:[%s1640_s15 + $0x44] ss:$8 sps:$4 sm:$0xff]   ;;  %v1374_v63 = vld [vmem:[%s1640_s15 + $0x40] ss:$8 sps:$4 sm:$0xff]   ;;  %v1377_v1 = vld [vmem:[%s1640_s15 + $0x50] ss:$8 sps:$4 sm:$0xff]  }
  0x24   : > { %v419_v51 = vpack.c.bf16 %v402_v48, %v401_v47  ;;  %v1378_v2 = vld [vmem:[%s1640_s15 + $0x64] ss:$8 sps:$4 sm:$0xff]   ;;  %v1380_v3 = vld [vmem:[%s1640_s15 + $0x60] ss:$8 sps:$4 sm:$0xff]   ;;  %v1381_v4 = vld [vmem:[%s1640_s15 + $0x74] ss:$8 sps:$4 sm:$0xff]  }
  0x25   : > { %551 = vmatpush1.bf16.msra.mxu0 %v425_v16  ;;  %v427_v54 = vpack.c.bf16 %v418_v53, %v417_v52  ;;  %v1383_v5 = vld [vmem:[%s1640_s15 + $0x70] ss:$8 sps:$4 sm:$0xff]   ;;  %v1388_v6 = vld [vmem:[%s1673_s11 + $0x20] sm:$0xff]   ;;  %v1389_v7 = vld [vmem:[%s1673_s11 + $0x28] sm:$0xff]  }
  0x26   : > { %552 = vmatprep.subr.bf16.mxu0 %v1487_v0  ;;  %v1390_v8 = vld [vmem:[%s1673_s11 + $0x30] sm:$0xff]   ;;  %v1391_v9 = vld [vmem:[%s1673_s11 + $0x38] sm:$0xff]   ;;  %v1392_v10 = vld [vmem:[%s1911_s5] sm:$0xff]   ;;  %s354_s11 = sand.u32 1, %s1461_s28  }
  0x27   : > { %1267 = vmatprep.subr.bf16.mxu1 %v1392_v10  ;;  %v1763_v11 = vld [vmem:[%s1910_s4] ss:$0 sm:$0xff]  ;;  %s1163_s10 = sshll.u32 %s354_s11, 7  ;;  %s1855_s20 = scalar_lea.sflag [#allocation3], %s354_s11 }
  0x28   : > { %1268 = vmatpush3.bf16.msra.mxu1 %v1392_v10  ;;  %s1807_s16 = scalar_lea.vmem [#allocation2], %s1163_s10 }
  0x29   : > { %553 = vmatpush1.bf16.msra.mxu0 %v424_v22  ;;  %1256 = vmatmul.mubr.msk.bf16.gmra.mxu1 %vm728_vm2, %v1387_v40  ;;  %s1052_s24 = sshll.u32 %s1807_s16, 4  ;;  %s1849_s24 = int_to_ptr.vmem [resolvable:$true] %s1052_s24 }
  0x2a   : > { %554 = vmatprep.subr.bf16.mxu0 %v1487_v0  ;;  %1259 = vmatprep.mubr.msk.bf16.mxu1 %vm728_vm2, %v1388_v6  ;;  %s1393_s30 = scalar_lea.vmem %s1849_s24, 2048 }
  0x2b   : > { %p1394_p0 = scmp.ne.s32.totalorder %s1849_s24, %s1393_s30 }
  0x2d   : > { %555 = vmatpush1.bf16.msra.mxu0 %v423_v29  ;;  %p1395_p1 = pnand %p1394_p0, %p1587_p3 }
  0x2e   : > { %556 = vmatprep.subr.bf16.mxu0 %v1487_v0 }
  0x2f   : > { %p1396_p2 = pneg %p1395_p1 }
  0x31   : > { %557 = vmatpush1.bf16.msra.mxu0 %v422_v37  ;;  %1260 = vmatmul.mubr.msk.bf16.gmra.mxu1 %vm728_vm2, %v1389_v7 }
  0x32   : > { %558 = vmatprep.subr.bf16.mxu0 %v1487_v0  ;;  %1263 = vmatprep.mubr.msk.bf16.mxu1 %vm728_vm2, %v1390_v8 }
  0x35   : > { %559 = vmatpush1.bf16.msra.mxu0 %v421_v41 }
  0x36   : > { %560 = vmatprep.subr.bf16.mxu0 %v1487_v0 }
  0x39   : > { %561 = vmatpush1.bf16.msra.mxu0 %v420_v46  ;;  %1264 = vmatmul.mubr.msk.bf16.gmra.mxu1 %vm728_vm2, %v1391_v9 }
  0x3a   : > { %562 = vmatprep.subr.bf16.mxu0 %v1487_v0 }
  0x3d   : > { %563 = vmatpush1.bf16.msra.mxu0 %v419_v51 }
  0x3e   : > { %578 = vmatprep.subr.bf16.mxu0 %v1487_v0  ;;  %v1375_v0 = vld [vmem:[%s1640_s15 + $0x54] ss:$8 sps:$4 sm:$0xff]   ;;  %s1488_s15 = smov [#allocation2]  }
  0x3f   : > { %s1397_s26 = sshll.u32 %s1488_s15, 4  ;;  %s1398_s26 = int_to_ptr.vmem [resolvable:$false] %s1397_s26 }
  0x40   : > { %s1399_s21 = scalar_lea.vmem %s1398_s26, 4096  ;;  %p1400_p4 = scmp.lt.s32.totalorder %s1849_s24, %s1398_s26 }
  0x41   : > { %579 = vmatpush2.bf16.msra.mxu0 %v427_v54  ;;  %p1401_p5 = scmp.lt.s32.totalorder %s1399_s21, %s1393_s30 }
  0x43   : > { %p1402_p6 = por %p1401_p5, %p1400_p4 }
  0x44   : > { %581 = vmatmul.mubr.bf16.vlgmr.msra.gmra.mxu0 %v1360_v55 }
  0x45   : > { %1190 = vmatprep.mubr.msk.bf16.mxu0 %vm523_vm1, %v1363_v56  ;;  %p1403_p7 = pnand %p1402_p6, %p1396_p2 }
  0x4c   : > { %589 = vmatmul.mubr.bf16.gmra.mxu0 %v1365_v57 }
  0x4d   : > { %1191 = vmatprep.mubr.msk.bf16.mxu0 %vm523_vm1, %v1366_v58 }
  0x54   : > { %597 = vmatmul.mubr.bf16.gmra.mxu0 %v1368_v59 }
  0x55   : > { %1192 = vmatprep.mubr.msk.bf16.mxu0 %vm523_vm1, %v1369_v60 }
  0x5c   : > { %605 = vmatmul.mubr.bf16.gmra.mxu0 %v1371_v61 }
  0x5d   : > { %1193 = vmatprep.mubr.msk.bf16.mxu0 %vm523_vm1, %v1372_v62 }
  0x64   : > { %613 = vmatmul.mubr.bf16.gmra.mxu0 %v1374_v63 }
  0x65   : > { %1194 = vmatprep.mubr.msk.bf16.mxu0 %vm523_vm1, %v1375_v0 }
  0x6c   : > { %621 = vmatmul.mubr.bf16.gmra.mxu0 %v1377_v1 }
  0x6d   : > { %1195 = vmatprep.mubr.msk.bf16.mxu0 %vm523_vm1, %v1378_v2 }
  0x74   : > { %629 = vmatmul.mubr.bf16.gmra.mxu0 %v1380_v3 }
  0x75   : > { %1196 = vmatprep.mubr.msk.bf16.mxu0 %vm523_vm1, %v1381_v4 }
  0x7c   : > { %637 = vmatmul.mubr.bf16.gmra.mxu0 %v1383_v5 }
 0x104   : > { %v582_v12 = vpop.f32.mrf.mxu0 }
 0x105   : > { %v583_v14 = vadd.f32 %v1763_v11, %v582_v12 }
 0x106   : > { %v584_v13 = vpop.f32.mrf.mxu0 }
 0x107   : > { %v645_v18 = vmax.f32 %v583_v14, 0.0 }
 0x108   : > { %v585_v15 = vpop.f32.mrf.mxu0 }
 0x109   : > { %v586_v16 = vadd.f32 %v1763_v11, %v585_v15 }
 0x10a   : > { %v587_v17 = vpop.f32.mrf.mxu0 }
 0x10b   : > { %v646_v19 = vmax.f32 %v586_v16, 0.0 }
 0x10c   : > { %v590_v20 = vpop.f32.mrf.mxu0 }
 0x10d   : > { %v661_v21 = vpack.c.bf16 %v646_v19, %v645_v18  ;;  %v591_v23 = vadd.f32 %v1763_v11, %v590_v20 }
 0x10e   : > { %v592_v22 = vpop.f32.mrf.mxu0 }
 0x10f   : > { %1269 = vmatprep.mubr.msk.bf16.mxu1 %vm523_vm1, %v661_v21  ;;  %v647_v27 = vmax.f32 %v591_v23, 0.0  ;;  %v1253_v21 = vpop.f32.mrf.mxu1 }
 0x110   : > { %v593_v24 = vpop.f32.mrf.mxu0 }
 0x111   : > { %v594_v25 = vadd.f32 %v1763_v11, %v593_v24  ;;  %v791_v22 = vpop.f32.mrf.mxu1 }
 0x112   : > { %v595_v26 = vpop.f32.mrf.mxu0 }
 0x113   : > { %v648_v28 = vmax.f32 %v594_v25, 0.0  ;;  %v1254_v23 = vpop.f32.mrf.mxu1 }
 0x114   : > { %v598_v29 = vpop.f32.mrf.mxu0 }
 0x115   : > { %v662_v30 = vpack.c.bf16 %v648_v28, %v647_v27  ;;  %v599_v32 = vadd.f32 %v1763_v11, %v598_v29  ;;  %v794_v24 = vpop.f32.mrf.mxu1 }
 0x116   : > { %v600_v31 = vpop.f32.mrf.mxu0 }
 0x117   : > { %1270 = vmatmul.mubr.msk.bf16.vlgmr.msra.gmra.mxu1 %vm523_vm1, %v662_v30  ;;  %v649_v36 = vmax.f32 %v599_v32, 0.0  ;;  %v1257_v25 = vpop.f32.mrf.mxu1 }
 0x118   : > { %v601_v33 = vpop.f32.mrf.mxu0 }
 0x119   : > { %v602_v34 = vadd.f32 %v1763_v11, %v601_v33  ;;  %v807_v26 = vpop.f32.mrf.mxu1 }
 0x11a   : > { %v603_v35 = vpop.f32.mrf.mxu0 }
 0x11b   : > { %v650_v37 = vmax.f32 %v602_v34, 0.0  ;;  %v1258_v27 = vpop.f32.mrf.mxu1 }
 0x11c   : > { %v606_v38 = vpop.f32.mrf.mxu0 }
 0x11d   : > { %v663_v39 = vpack.c.bf16 %v650_v37, %v649_v36  ;;  %v607_v41 = vadd.f32 %v1763_v11, %v606_v38  ;;  %v810_v28 = vpop.f32.mrf.mxu1  ;;  %v1801_v37 = vld [vmem:[%s1913_s7] ss:$0 sm:$0xff] }
 0x11e   : > { %v608_v40 = vpop.f32.mrf.mxu0 }
 0x11f   : > { %1273 = vmatprep.mubr.msk.bf16.mxu1 %vm523_vm1, %v663_v39  ;;  %v651_v45 = vmax.f32 %v607_v41, 0.0  ;;  %v1261_v29 = vpop.f32.mrf.mxu1 }
 0x120   : > { %v609_v42 = vpop.f32.mrf.mxu0 }
 0x121   : > { %v610_v43 = vadd.f32 %v1763_v11, %v609_v42  ;;  %v823_v30 = vpop.f32.mrf.mxu1 }
 0x122   : > { %v611_v44 = vpop.f32.mrf.mxu0 }
 0x123   : > { %v652_v46 = vmax.f32 %v610_v43, 0.0  ;;  %v1262_v31 = vpop.f32.mrf.mxu1 }
 0x124   : > { %v614_v47 = vpop.f32.mrf.mxu0 }
 0x125   : > { %v664_v48 = vpack.c.bf16 %v652_v46, %v651_v45  ;;  %v615_v50 = vadd.f32 %v1763_v11, %v614_v47 }
 0x126   : > { %v616_v49 = vpop.f32.mrf.mxu0 }
 0x127   : > { %1274 = vmatmul.mubr.msk.bf16.gmra.mxu1 %vm523_vm1, %v664_v48  ;;  %v653_v54 = vmax.f32 %v615_v50, 0.0 }
 0x128   : > { %v617_v51 = vpop.f32.mrf.mxu0 }
 0x129   : > { %v618_v52 = vadd.f32 %v1763_v11, %v617_v51 }
 0x12a   : > { %v619_v53 = vpop.f32.mrf.mxu0 }
 0x12b   : > { %v654_v55 = vmax.f32 %v618_v52, 0.0 }
 0x12c   : > { %v622_v56 = vpop.f32.mrf.mxu0 }
 0x12d   : > { %v665_v57 = vpack.c.bf16 %v654_v55, %v653_v54  ;;  %v623_v59 = vadd.f32 %v1763_v11, %v622_v56 }
 0x12e   : > { %v624_v58 = vpop.f32.mrf.mxu0 }
 0x12f   : > { %1277 = vmatprep.mubr.msk.bf16.mxu1 %vm523_vm1, %v665_v57  ;;  %v655_v63 = vmax.f32 %v623_v59, 0.0 }
 0x130   : > { %v625_v60 = vpop.f32.mrf.mxu0 }
 0x131   : > { %v626_v61 = vadd.f32 %v1763_v11, %v625_v60 }
 0x132   : > { %v627_v62 = vpop.f32.mrf.mxu0 }
 0x133   : > { %v656_v0 = vmax.f32 %v626_v61, 0.0 }
 0x134   : > { %v630_v1 = vpop.f32.mrf.mxu0 }
 0x135   : > { %v666_v2 = vpack.c.bf16 %v656_v0, %v655_v63  ;;  %v631_v4 = vadd.f32 %v1763_v11, %v630_v1 }
 0x136   : > { %v632_v3 = vpop.f32.mrf.mxu0 }
 0x137   : > { %1278 = vmatmul.mubr.msk.bf16.gmra.mxu1 %vm523_vm1, %v666_v2  ;;  %v657_v8 = vmax.f32 %v631_v4, 0.0 }
 0x138   : > { %v633_v5 = vpop.f32.mrf.mxu0 }
 0x139   : > { %v634_v6 = vadd.f32 %v1763_v11, %v633_v5 }
 0x13a   : > { %v635_v7 = vpop.f32.mrf.mxu0 }
 0x13b   : > { %v658_v9 = vmax.f32 %v634_v6, 0.0 }
 0x13c   : > { %v638_v10 = vpop.f32.mrf.mxu0 }
 0x13d   : > { %v667_v12 = vpack.c.bf16 %v658_v9, %v657_v8  ;;  %v639_v14 = vadd.f32 %v1763_v11, %v638_v10 }
 0x13e   : > { %v640_v13 = vpop.f32.mrf.mxu0 }
 0x13f   : > { %1281 = vmatprep.mubr.msk.bf16.mxu1 %vm523_vm1, %v667_v12  ;;  %v659_v18 = vmax.f32 %v639_v14, 0.0 }
 0x140   : > { %v641_v15 = vpop.f32.mrf.mxu0 }
 0x141   : > { %v642_v16 = vadd.f32 %v1763_v11, %v641_v15  ;;  %v826_v11 = vpop.f32.mrf.mxu1 }
 0x142   : > { %v643_v17 = vpop.f32.mrf.mxu0 }
 0x143   : > { %v660_v19 = vmax.f32 %v642_v16, 0.0  ;;  %v1789_v32 = vpop.f32.mrf.mxu1 }
 0x145   : > { %v668_v20 = vpack.c.bf16 %v660_v19, %v659_v18  ;;  %v1791_v33 = vpop.f32.mrf.mxu1 }
 0x147   : > { %1282 = vmatmul.mubr.msk.bf16.gmra.mxu1 %vm523_vm1, %v668_v20  ;;  %v1793_v34 = vpop.f32.mrf.mxu1 }
 0x149   : > { %v1795_v35 = vpop.f32.mrf.mxu1 }
 0x1d7   : > { %v1271_v36 = vpop.f32.mrf.mxu1 }
 0x1d8   : > { %v927_v38 = vadd.f32 %v1271_v36, %v1253_v21 }
 0x1d9   : > { %v918_v39 = vpop.f32.mrf.mxu1 }
 0x1da   : > { %v990_v40 = vadd.f32 %v1801_v37, %v927_v38  ;;  %v919_v41 = vadd.f32 %v918_v39, %v791_v22 }
 0x1db   : > { %v1272_v42 = vpop.f32.mrf.mxu1 }
 0x1dc   : > { %v1006_v43 = vmax.f32 %v990_v40, 0.0  ;;  %v988_v44 = vadd.f32 %v1801_v37, %v919_v41  ;;  %v930_v45 = vadd.f32 %v1272_v42, %v1254_v23 }
 0x1dd   : > { %v921_v46 = vpop.f32.mrf.mxu1 }
 0x1de   : > { %1022 = vst [vmem:[%s1807_s16 + $0x10] sm:$0xff] %v1006_v43  ;;  %v1004_v47 = vmax.f32 %v988_v44, 0.0  ;;  %v991_v48 = vadd.f32 %v1801_v37, %v930_v45  ;;  %v922_v49 = vadd.f32 %v921_v46, %v794_v24 }
 0x1e0   : > { %1020 = vst [vmem:[%s1807_s16] sm:$0xff] %v1004_v47  ;;  %v1007_v50 = vmax.f32 %v991_v48, 0.0  ;;  %v989_v51 = vadd.f32 %v1801_v37, %v922_v49 }
 0x1e2   : > { %1023 = vst [vmem:[%s1807_s16 + $0x18] sm:$0xff] %v1007_v50  ;;  %v1005_v52 = vmax.f32 %v989_v51, 0.0 }
 0x1e4   : > { %1021 = vst [vmem:[%s1807_s16 + $0x8] sm:$0xff] %v1005_v52 }
 0x1e7   : > { %v1275_v53 = vpop.f32.mrf.mxu1 }
 0x1e8   : > { %v943_v54 = vadd.f32 %v1275_v53, %v1257_v25 }
 0x1e9   : > { %v934_v55 = vpop.f32.mrf.mxu1 }
 0x1ea   : > { %v994_v56 = vadd.f32 %v1801_v37, %v943_v54  ;;  %v935_v57 = vadd.f32 %v934_v55, %v807_v26 }
 0x1eb   : > { %v1276_v58 = vpop.f32.mrf.mxu1 }
 0x1ec   : > { %v1010_v59 = vmax.f32 %v994_v56, 0.0  ;;  %v992_v60 = vadd.f32 %v1801_v37, %v935_v57  ;;  %v946_v61 = vadd.f32 %v1276_v58, %v1258_v27 }
 0x1ed   : > { %v937_v62 = vpop.f32.mrf.mxu1 }
 0x1ee   : > { %1026 = vst [vmem:[%s1807_s16 + $0x30] sm:$0xff] %v1010_v59  ;;  %v1008_v63 = vmax.f32 %v992_v60, 0.0  ;;  %v995_v0 = vadd.f32 %v1801_v37, %v946_v61  ;;  %v938_v1 = vadd.f32 %v937_v62, %v810_v28 }
 0x1f0   : > { %1024 = vst [vmem:[%s1807_s16 + $0x20] sm:$0xff] %v1008_v63  ;;  %v1011_v2 = vmax.f32 %v995_v0, 0.0  ;;  %v993_v3 = vadd.f32 %v1801_v37, %v938_v1 }
 0x1f2   : > { %1027 = vst [vmem:[%s1807_s16 + $0x38] sm:$0xff] %v1011_v2  ;;  %v1009_v4 = vmax.f32 %v993_v3, 0.0 }
 0x1f4   : > { %1025 = vst [vmem:[%s1807_s16 + $0x28] sm:$0xff] %v1009_v4 }
 0x1f7   : > { %v1279_v5 = vpop.f32.mrf.mxu1 }
 0x1f8   : > { %v959_v6 = vadd.f32 %v1279_v5, %v1261_v29 }
 0x1f9   : > { %v950_v7 = vpop.f32.mrf.mxu1 }
 0x1fa   : > { %v998_v8 = vadd.f32 %v1801_v37, %v959_v6  ;;  %v951_v9 = vadd.f32 %v950_v7, %v823_v30 }
 0x1fb   : > { %v1280_v10 = vpop.f32.mrf.mxu1 }
 0x1fc   : > { %v1014_v12 = vmax.f32 %v998_v8, 0.0  ;;  %v996_v13 = vadd.f32 %v1801_v37, %v951_v9  ;;  %v962_v14 = vadd.f32 %v1280_v10, %v1262_v31 }
 0x1fd   : > { %v953_v15 = vpop.f32.mrf.mxu1 }
 0x1fe   : > { %1030 = vst [vmem:[%s1807_s16 + $0x50] sm:$0xff] %v1014_v12  ;;  %v1012_v16 = vmax.f32 %v996_v13, 0.0  ;;  %v999_v17 = vadd.f32 %v1801_v37, %v962_v14  ;;  %v954_v18 = vadd.f32 %v953_v15, %v826_v11 }
 0x200   : > { %1028 = vst [vmem:[%s1807_s16 + $0x40] sm:$0xff] %v1012_v16  ;;  %v1015_v19 = vmax.f32 %v999_v17, 0.0  ;;  %v997_v20 = vadd.f32 %v1801_v37, %v954_v18 }
 0x202   : > { %1031 = vst [vmem:[%s1807_s16 + $0x58] sm:$0xff] %v1015_v19  ;;  %v1013_v21 = vmax.f32 %v997_v20, 0.0 }
 0x204   : > { %1029 = vst [vmem:[%s1807_s16 + $0x48] sm:$0xff] %v1013_v21 }
 0x207   : > { %v1283_v22 = vpop.f32.mrf.mxu1 }
 0x208   : > { %v975_v23 = vadd.f32 %v1283_v22, %v1789_v32 }
 0x209   : > { %v966_v24 = vpop.f32.mrf.mxu1 }
 0x20a   : > { %v1002_v25 = vadd.f32 %v1801_v37, %v975_v23  ;;  %v967_v26 = vadd.f32 %v966_v24, %v1791_v33 }
 0x20b   : > { %v1284_v27 = vpop.f32.mrf.mxu1 }
 0x20c   : > { %v1018_v28 = vmax.f32 %v1002_v25, 0.0  ;;  %v1000_v29 = vadd.f32 %v1801_v37, %v967_v26  ;;  %v978_v30 = vadd.f32 %v1284_v27, %v1793_v34 }
 0x20d   : > { %v969_v31 = vpop.f32.mrf.mxu1 }
 0x20e   : > { %1034 = vst [vmem:[%s1807_s16 + $0x70] sm:$0xff] %v1018_v28  ;;  %v1016_v11 = vmax.f32 %v1000_v29, 0.0  ;;  %v1003_v32 = vadd.f32 %v1801_v37, %v978_v30  ;;  %v970_v36 = vadd.f32 %v969_v31, %v1795_v35 }
 0x210   : > { %1032 = vst [vmem:[%s1807_s16 + $0x60] sm:$0xff] %v1016_v11  ;;  %v1019_v33 = vmax.f32 %v1003_v32, 0.0  ;;  %v1001_v34 = vadd.f32 %v1801_v37, %v970_v36 }
 0x212   : > { %1035 = vst [vmem:[%s1807_s16 + $0x78] sm:$0xff] %v1019_v33  ;;  %v1017_v38 = vmax.f32 %v1001_v34, 0.0 }
 0x214   : > { %1033 = vst [vmem:[%s1807_s16 + $0x68] sm:$0xff] %v1017_v38 }
 0x215   : > { %1406 = shalt.err (!%p1403_p7)
}
 0x216   : > { %s1407_s11 = scalar_lea.hbm %s1845_s14, 2048  ;;  %s1411_s16 = scalar_lea.hbm %s1914_s8, 8192 }
 0x217   : > { %p1408_p9 = scmp.ne.s32.totalorder %s1845_s14, %s1407_s11  ;;  %p1412_p12 = scmp.lt.s32.totalorder %s1845_s14, %s1914_s8 }
 0x218   : > { %p1413_p13 = scmp.lt.s32.totalorder %s1411_s16, %s1407_s11 }
 0x219   : > { %p1409_p10 = pnand %p1408_p9, %p1587_p3 }
 0x21a   : > { %p1414_p0 = por %p1413_p13, %p1412_p12 }
 0x21b   : > { %p1410_p11 = pneg %p1409_p10 }
 0x21d   : > { %p1415_p1 = pnand %p1414_p0, %p1410_p11 }
 0x21f   : > { %1418 = shalt.err (!%p1415_p1)
}
 0x220   : > { %s1489_s9 = smov 128   ;;  %s1490_s17 = smov 8  }
 0x221   : > { %1286 = dma.vmem_to_hbm [thread:$0]  (%p1587_p3), %s1849_s24, 2048, %s1845_s14, %s1855_s20, %s1489_s9, %s1489_s9, %s1490_s17  }
 0x222 PF: > { %p1292_p2 = scmp.ge.s32.totalorder %s1485_s12, 2  ;;  %s1067_s13 = sand.u32 1, %s1457_s27  }
 0x223   : > { %s1068_s30 = scalar_lea.sflag [#allocation3], %s1067_s13 }
 0x224   : > { %p1289_p4 = pnand %p1292_p2, %p1596_p8 }
 0x226   : > { %p1290_p5 = pneg %p1289_p4 }
 0x228   : > { %1452 = dma.done.wait (%p1290_p5), %s1068_s30, 2048  }
 0x229   : > { %1454 = vsyncadd (%p1290_p5), %s1068_s30, 4294965248  ;;  %s21_s12 = sadd.s32 1, %s1485_s12   ;;  %s1926_s15 = sld [smem:[#allocation9_spill]] }
 0x22a   : > { %p18_p6 = scmp.ge.s32.totalorder %s21_s12, 6   ;;  %s1927_s30 = sld [smem:[#allocation5_spill]] }
 0x22b   : > { %s1928_s9 = sld [smem:[#allocation6_spill]]  ;;  %s1931_s27 = smov %s1461_s28 }
 0x22c   : > { %s1929_s10 = sld [smem:[#allocation7_spill]]  ;;  %s1932_s28 = smov %s1465_s29 }
 0x22d   : > { %s1930_s11 = sld [smem:[#allocation8_spill]]  ;;  %20 = sbr.rel (!%p18_p6) target bundleno = 5 (0x5), region = 93 }
 0x22f   : > { %s1933_s29 = smov %s1926_s15 }
 0x232   :  { %1073 = vsyncpa [#allocation3], 1 }
 0x233   :  { %1075 = vsyncpa [#allocation3 + $0x1], 1 }

</bundles_post_ra>
